<compile_context>
chip_gen: v5e
topology: v5e:2x2
jax: 0.10.0
libtpu: 0.0.40
codegen_flags: <defaults>
</compile_context>

<pallas_src>
import functools

import jax
import jax.numpy as jnp
from jax.experimental import pallas as pl
from jax.experimental.pallas import tpu as pltpu

_OUT_LANES = 128     # packed output width: one dense (unmasked) 128-lane store
_NORM_OFFSET = 64    # normalized copy lives at lanes [64 : 64 + no_angles*2]


def _round_up(x, m):
    return ((x + m - 1) // m) * m


def _make_kernel(no_blocks, eps, compute_dtype):
    f32 = jnp.float32

    def mm(a, w):
        # MXU matmul with f32 accumulation; activations/weights may be bf16.
        return jnp.dot(a.astype(compute_dtype), w.astype(compute_dtype),
                       preferred_element_type=f32)

    def kernel(*refs):
        # refs layout:
        #   s, s_initial,
        #   w_in, w_initial, b_head,
        #   [w1, b1, w2, b2] * no_blocks,
        #   w_out_packed, b_out_packed,
        #   packed_out
        # Weight refs are read at point of use (not hoisted) to keep live ranges
        # short at real model sizes (c_hidden=128).
        s_ref, si_ref = refs[0], refs[1]
        p = 2

        # Head (Alg. 20 line 11): relu(s) @ w_in + relu(s_initial) @ w_initial + b.
        # b_head = b_in + b_initial is pre-summed in the wrapper (f32).
        a = (mm(jnp.maximum(s_ref[...], 0), refs[p][...])
             + mm(jnp.maximum(si_ref[...], 0), refs[p + 1][...])
             + refs[p + 2][...])
        p += 3

        # AngleResnetBlock x no_blocks (elementwise work + residual in f32).
        for _ in range(no_blocks):
            h = jnp.maximum(a, 0.0)
            h = mm(h, refs[p][...]) + refs[p + 1][...]
            h = jnp.maximum(h, 0.0)
            h = mm(h, refs[p + 2][...]) + refs[p + 3][...]
            a = a + h
            p += 4

        # Final relu -> linear_out.  w_out is duplicated into lanes [0:n_out] and
        # [64:64+n_out] so one matmul yields both the unnormalized copy and the
        # copy to be normalized; all other lanes are zero.
        a = jnp.maximum(a, 0.0)
        out = mm(a, refs[p][...]) + refs[p + 1][...]          # [tile_n, 128] f32
        p += 2
        packed_ref = refs[p]

        # Per-angle (adjacent lane pair) sum of squares via XLU rolls:
        #   even lane j pairs with j+1 (rotate by width-1), odd lane j with j-1
        #   (rotate by 1).  Exact f32; lands in the otherwise-idle XLU slot.
        #   Zero-padded lanes give denom_sq = 0 -> clamped to eps -> value 0.
        sq = out * out
        width = out.shape[-1]
        lane = jax.lax.broadcasted_iota(jnp.int32, out.shape, dimension=1)
        partner = jnp.where((lane & 1) == 0,
                            pltpu.roll(sq, shift=width - 1, axis=1),
                            pltpu.roll(sq, shift=1, axis=1))
        denom_sq = sq + partner
        normed = out * jax.lax.rsqrt(jnp.maximum(denom_sq, eps))

        # Lanes < 64: unnormalized; lanes >= 64: normalized. One dense store.
        packed_ref[...] = jnp.where(lane < _NORM_OFFSET, out, normed)

    return kernel


def angle_resnet_pallas(s, s_initial, params, *, no_angles, eps,
                        tile_n=1024, use_bf16=True):
    """s, s_initial: [*, c_in] float32. Returns (unnormalized, normalized),
    each of shape [*, no_angles, 2] (float32)."""
    batch_shape = s.shape[:-1]
    c_in = s.shape[-1]
    c_hidden = params["w_in"].shape[-1]
    n_out = no_angles * 2
    assert n_out <= _NORM_OFFSET, "packed-output layout assumes no_angles*2 <= 64"

    # bf16 activations halve the dominant input HBM read stream (native MXU dtype
    # on all three generations); all non-matmul math stays f32 inside the kernel.
    in_dtype = jnp.bfloat16 if use_bf16 else jnp.float32
    s2 = s.reshape(-1, c_in).astype(in_dtype)
    si2 = s_initial.reshape(-1, c_in).astype(in_dtype)
    n = s2.shape[0]

    # Row tile: multiple of 8, no larger than the (8-padded) row count.  1024
    # amortizes the ~0.35us per-grid-step overhead; at real sizes (n in the
    # thousands) the grid has >=2 steps so "parallel" shards rows across both
    # v7x TensorCores.  Sweep 512..2048 per chip.
    tile_n = max(8, min(int(tile_n), _round_up(n, 8)))
    tile_n = _round_up(tile_n, 8)
    n_pad = _round_up(n, tile_n)
    if n_pad != n:
        # Only when n % tile_n != 0; padded rows produce garbage rows that are
        # sliced off below (each output row depends only on its own input row).
        s2 = jnp.pad(s2, ((0, n_pad - n), (0, 0)))
        si2 = jnp.pad(si2, ((0, n_pad - n), (0, 0)))

    no_blocks = len(params["blocks"])

    # Head biases pre-summed once (f32).
    b_head = params["b_in"] + params["b_initial"]                        # [1, c_hidden]

    # Packed output projection: duplicate w_out/b_out into lanes [0:n_out]
    # (unnormalized copy) and [64:64+n_out] (copy to be normalized); rest zero.
    w_out = params["w_out"]                                              # [c_hidden, n_out]
    b_out = params["b_out"]                                              # [1, n_out]
    w_out_packed = jnp.zeros((c_hidden, _OUT_LANES), jnp.float32)
    w_out_packed = (w_out_packed.at[:, :n_out].set(w_out)
                    .at[:, _NORM_OFFSET:_NORM_OFFSET + n_out].set(w_out))
    b_out_packed = jnp.zeros((1, _OUT_LANES), jnp.float32)
    b_out_packed = (b_out_packed.at[:, :n_out].set(b_out)
                    .at[:, _NORM_OFFSET:_NORM_OFFSET + n_out].set(b_out))

    # Weights cast to bf16 once here (halves weight DMA); biases stay f32.
    wcast = (lambda w: w.astype(jnp.bfloat16)) if use_bf16 else (lambda w: w)

    weight_args = [wcast(params["w_in"]), wcast(params["w_initial"]), b_head]
    for blk in params["blocks"]:
        weight_args += [wcast(blk["w1"]), blk["b1"], wcast(blk["w2"]), blk["b2"]]
    weight_args += [wcast(w_out_packed), b_out_packed]

    grid = (n_pad // tile_n,)

    def row_spec(c):
        return pl.BlockSpec((tile_n, c), lambda i: (i, 0))

    def full_spec(arr):
        return pl.BlockSpec(arr.shape, lambda i: (0,) * arr.ndim)

    in_specs = [row_spec(c_in), row_spec(c_in)] + [full_spec(w) for w in weight_args]
    out_specs = row_spec(_OUT_LANES)

    # Explicit VMEM budget: double-buffered row blocks + weights + slack for f32
    # intermediates, clamped to [32 MiB, 60 MiB] (stays under v7x's 64 MiB physical,
    # matches/raises the 32 MiB scoped default elsewhere).
    in_bytes = 2 if use_bf16 else 4
    weight_bytes = sum(int(w.size) * w.dtype.itemsize for w in weight_args)
    vmem_est = (2 * 2 * tile_n * c_in * in_bytes          # two inputs, double-buffered
                + 2 * tile_n * _OUT_LANES * 4             # packed output, double-buffered
                + 2 * weight_bytes
                + 6 * tile_n * max(c_hidden, _OUT_LANES) * 4)   # live f32 intermediates
    vmem_limit = int(min(max(2 * vmem_est, 32 * 1024 * 1024), 60 * 1024 * 1024))

    compute_dtype = jnp.bfloat16 if use_bf16 else jnp.float32
    kernel = _make_kernel(no_blocks, eps, compute_dtype)

    packed = pl.pallas_call(
        kernel,
        out_shape=jax.ShapeDtypeStruct((n_pad, _OUT_LANES), jnp.float32),
        grid_spec=pltpu.PrefetchScalarGridSpec(
            num_scalar_prefetch=0,
            grid=grid,
            in_specs=in_specs,
            out_specs=out_specs,
        ),
        compiler_params=pltpu.CompilerParams(
            dimension_semantics=("parallel",),
            vmem_limit_bytes=vmem_limit),
    )(s2, si2, *weight_args)

    unnorm = packed[:n, :n_out].reshape(batch_shape + (no_angles, 2))
    norm = packed[:n, _NORM_OFFSET:_NORM_OFFSET + n_out].reshape(
        batch_shape + (no_angles, 2))
    return unnorm, norm


def angle_resnet_ref(s, s_initial, params, *, no_angles, eps):
    """Plain-JAX reference mirroring the PyTorch forward."""
    si = jax.nn.relu(s_initial) @ params["w_initial"] + params["b_initial"]
    x = jax.nn.relu(s) @ params["w_in"] + params["b_in"]
    x = x + si
    for blk in params["blocks"]:
        h = jax.nn.relu(x) @ blk["w1"] + blk["b1"]
        h = jax.nn.relu(h) @ blk["w2"] + blk["b2"]
        x = x + h
    x = jax.nn.relu(x) @ params["w_out"] + params["b_out"]
    x = x.reshape(x.shape[:-1] + (no_angles, 2))
    unnorm = x
    denom = jnp.sqrt(jnp.maximum(jnp.sum(x ** 2, axis=-1, keepdims=True), eps))
    return unnorm, x / denom


def make_params(key, c_in, c_hidden, no_blocks, no_angles):
    # Deterministic synthetic parameters (shapes match the PyTorch module;
    # weights stored as (in, out) so the kernel computes x @ W + b).
    def lin(k, cin, cout, scale=0.1):
        kw, kb = jax.random.split(k)
        return (scale * jax.random.normal(kw, (cin, cout), jnp.float32),
                scale * jax.random.normal(kb, (1, cout), jnp.float32))

    keys = jax.random.split(key, 3 + 2 * no_blocks)
    w_initial, b_initial = lin(keys[0], c_in, c_hidden)
    w_in, b_in = lin(keys[1], c_in, c_hidden)
    blocks = []
    for b in range(no_blocks):
        w1, b1 = lin(keys[2 + 2 * b], c_hidden, c_hidden)
        w2, b2 = lin(keys[3 + 2 * b], c_hidden, c_hidden)
        blocks.append({"w1": w1, "b1": b1, "w2": w2, "b2": b2})
    w_out, b_out = lin(keys[2 + 2 * no_blocks], c_hidden, no_angles * 2)
    return {"w_initial": w_initial, "b_initial": b_initial,
            "w_in": w_in, "b_in": b_in,
            "blocks": blocks,
            "w_out": w_out, "b_out": b_out}


def _check_outputs(unnorm, norm, ref_unnorm, ref_norm, *, atol, rtol, norm_bound, tag):
    assert unnorm.shape == ref_unnorm.shape and norm.shape == ref_norm.shape
    max_diff = float(jnp.max(jnp.abs(unnorm - ref_unnorm)))
    assert jnp.allclose(unnorm, ref_unnorm, atol=atol, rtol=rtol), (
        f"[{tag}] unnormalized mismatch: max |diff| = {max_diff}")
    # For the normalized output, near-degenerate pairs (|pair| ~ 0) amplify
    # benign numerical differences arbitrarily, so compare the magnitude-scaled
    # error: |norm - ref_norm| * |pair| is bounded by ~2x the unnormalized error.
    mag = jnp.sqrt(jnp.sum(ref_unnorm ** 2, axis=-1, keepdims=True))
    scaled_err = float(jnp.max(jnp.abs(norm - ref_norm) * jnp.maximum(mag, 1e-3)))
    assert scaled_err <= norm_bound, (
        f"[{tag}] normalized mismatch: max scaled |diff| = {scaled_err}")


if __name__ == "__main__":
    c_in = 32
    c_hidden = 32
    no_blocks = 2
    no_angles = 7
    eps = 1e-8
    batch, seq = 2, 8  # leading dims [*] = (batch, seq)

    key = jax.random.PRNGKey(0)
    k_s, k_si, k_p = jax.random.split(key, 3)
    s = jax.random.normal(k_s, (batch, seq, c_in), jnp.float32)
    s_initial = jax.random.normal(k_si, (batch, seq, c_in), jnp.float32)
    params = make_params(k_p, c_in, c_hidden, no_blocks, no_angles)

    ref_unnorm, ref_norm = angle_resnet_ref(s, s_initial, params,
                                            no_angles=no_angles, eps=eps)

    run = functools.partial(angle_resnet_pallas, no_angles=no_angles, eps=eps)

    # f32-activation path (tight structural check).
    unnorm, norm = run(s, s_initial, params, use_bf16=False)
    jax.block_until_ready((unnorm, norm))
    assert unnorm.shape == (batch, seq, no_angles, 2)
    assert norm.shape == (batch, seq, no_angles, 2)
    _check_outputs(unnorm, norm, ref_unnorm, ref_norm,
                   atol=1e-2, rtol=3e-2, norm_bound=5e-2, tag="f32")

    # bf16 activation + weight path (the performance config; relaxed tolerance).
    unnorm_bf, norm_bf = run(s, s_initial, params, use_bf16=True)
    jax.block_until_ready((unnorm_bf, norm_bf))
    _check_outputs(unnorm_bf, norm_bf, ref_unnorm, ref_norm,
                   atol=3e-2, rtol=6e-2, norm_bound=1e-1, tag="bf16")

    print("KERNEL_OK")
</pallas_src>

<mosaic_0001>
module attributes {stable_mosaic.version = 11 : i64} {
  func.func @kernel(%arg0: i32, %arg1: memref<16x32xf32, #tpu.memory_space<vmem>>, %arg2: memref<16x32xf32, #tpu.memory_space<vmem>>, %arg3: memref<32x32xf32, #tpu.memory_space<vmem>>, %arg4: memref<32x32xf32, #tpu.memory_space<vmem>>, %arg5: memref<1x32xf32, #tpu.memory_space<vmem>>, %arg6: memref<32x32xf32, #tpu.memory_space<vmem>>, %arg7: memref<1x32xf32, #tpu.memory_space<vmem>>, %arg8: memref<32x32xf32, #tpu.memory_space<vmem>>, %arg9: memref<1x32xf32, #tpu.memory_space<vmem>>, %arg10: memref<32x32xf32, #tpu.memory_space<vmem>>, %arg11: memref<1x32xf32, #tpu.memory_space<vmem>>, %arg12: memref<32x32xf32, #tpu.memory_space<vmem>>, %arg13: memref<1x32xf32, #tpu.memory_space<vmem>>, %arg14: memref<32x128xf32, #tpu.memory_space<vmem>>, %arg15: memref<1x128xf32, #tpu.memory_space<vmem>>, %arg16: memref<16x128xf32, #tpu.memory_space<vmem>>) attributes {dimension_semantics = [#tpu.dimension_semantics<parallel>], iteration_bounds = array<i64: 1>, scalar_prefetch = 0 : i64, scratch_operands = 0 : i64, tpu.core_type = #tpu.core_type<tc>, window_params = [{transform_indices = @transform_0, window_bounds = array<i64: 16, 32>}, {transform_indices = @transform_1, window_bounds = array<i64: 16, 32>}, {pipeline_mode = #tpu.pipeline_mode<synchronous>, transform_indices = @transform_2, window_bounds = array<i64: 32, 32>}, {pipeline_mode = #tpu.pipeline_mode<synchronous>, transform_indices = @transform_3, window_bounds = array<i64: 32, 32>}, {pipeline_mode = #tpu.pipeline_mode<synchronous>, transform_indices = @transform_4, window_bounds = array<i64: 1, 32>}, {pipeline_mode = #tpu.pipeline_mode<synchronous>, transform_indices = @transform_5, window_bounds = array<i64: 32, 32>}, {pipeline_mode = #tpu.pipeline_mode<synchronous>, transform_indices = @transform_6, window_bounds = array<i64: 1, 32>}, {pipeline_mode = #tpu.pipeline_mode<synchronous>, transform_indices = @transform_7, window_bounds = array<i64: 32, 32>}, {pipeline_mode = #tpu.pipeline_mode<synchronous>, transform_indices = @transform_8, window_bounds = array<i64: 1, 32>}, {pipeline_mode = #tpu.pipeline_mode<synchronous>, transform_indices = @transform_9, window_bounds = array<i64: 32, 32>}, {pipeline_mode = #tpu.pipeline_mode<synchronous>, transform_indices = @transform_10, window_bounds = array<i64: 1, 32>}, {pipeline_mode = #tpu.pipeline_mode<synchronous>, transform_indices = @transform_11, window_bounds = array<i64: 32, 32>}, {pipeline_mode = #tpu.pipeline_mode<synchronous>, transform_indices = @transform_12, window_bounds = array<i64: 1, 32>}, {pipeline_mode = #tpu.pipeline_mode<synchronous>, transform_indices = @transform_13, window_bounds = array<i64: 32, 128>}, {pipeline_mode = #tpu.pipeline_mode<synchronous>, transform_indices = @transform_14, window_bounds = array<i64: 1, 128>}, {transform_indices = @transform_15, window_bounds = array<i64: 16, 128>}]} {
    %c0 = arith.constant 0 : index
    %c0_0 = arith.constant 0 : index
    %0 = vector.load %arg1[%c0, %c0_0] : memref<16x32xf32, #tpu.memory_space<vmem>>, vector<16x32xf32>
    %cst = arith.constant 0.000000e+00 : f32
    %1 = vector.broadcast %cst : f32 to vector<16x32xf32>
    %2 = arith.maximumf %0, %1 : vector<16x32xf32>
    %c0_1 = arith.constant 0 : index
    %c0_2 = arith.constant 0 : index
    %3 = vector.load %arg3[%c0_1, %c0_2] : memref<32x32xf32, #tpu.memory_space<vmem>>, vector<32x32xf32>
    %cst_3 = arith.constant dense<0.000000e+00> : vector<16x32xf32>
    %4 = tpu.matmul %2, %3, %cst_3 {dimension_numbers = #tpu.dot_dimension_numbers<[1], [0], [0], [1], [0, 0, 1, 1], [], []>} : vector<16x32xf32>, vector<32x32xf32>, vector<16x32xf32> -> vector<16x32xf32>
    %c0_4 = arith.constant 0 : index
    %c0_5 = arith.constant 0 : index
    %5 = vector.load %arg2[%c0_4, %c0_5] : memref<16x32xf32, #tpu.memory_space<vmem>>, vector<16x32xf32>
    %cst_6 = arith.constant 0.000000e+00 : f32
    %6 = vector.broadcast %cst_6 : f32 to vector<16x32xf32>
    %7 = arith.maximumf %5, %6 : vector<16x32xf32>
    %c0_7 = arith.constant 0 : index
    %c0_8 = arith.constant 0 : index
    %8 = vector.load %arg4[%c0_7, %c0_8] : memref<32x32xf32, #tpu.memory_space<vmem>>, vector<32x32xf32>
    %cst_9 = arith.constant dense<0.000000e+00> : vector<16x32xf32>
    %9 = tpu.matmul %7, %8, %cst_9 {dimension_numbers = #tpu.dot_dimension_numbers<[1], [0], [0], [1], [0, 0, 1, 1], [], []>} : vector<16x32xf32>, vector<32x32xf32>, vector<16x32xf32> -> vector<16x32xf32>
    %10 = arith.addf %4, %9 : vector<16x32xf32>
    %c0_10 = arith.constant 0 : index
    %c0_11 = arith.constant 0 : index
    %11 = vector.load %arg5[%c0_10, %c0_11] : memref<1x32xf32, #tpu.memory_space<vmem>>, vector<1x32xf32>
    %12 = vector.broadcast %11 : vector<1x32xf32> to vector<16x32xf32>
    %13 = arith.addf %10, %12 : vector<16x32xf32>
    %cst_12 = arith.constant 0.000000e+00 : f32
    %14 = vector.broadcast %cst_12 : f32 to vector<16x32xf32>
    %15 = arith.maximumf %13, %14 : vector<16x32xf32>
    %c0_13 = arith.constant 0 : index
    %c0_14 = arith.constant 0 : index
    %16 = vector.load %arg6[%c0_13, %c0_14] : memref<32x32xf32, #tpu.memory_space<vmem>>, vector<32x32xf32>
    %cst_15 = arith.constant dense<0.000000e+00> : vector<16x32xf32>
    %17 = tpu.matmul %15, %16, %cst_15 {dimension_numbers = #tpu.dot_dimension_numbers<[1], [0], [0], [1], [0, 0, 1, 1], [], []>} : vector<16x32xf32>, vector<32x32xf32>, vector<16x32xf32> -> vector<16x32xf32>
    %c0_16 = arith.constant 0 : index
    %c0_17 = arith.constant 0 : index
    %18 = vector.load %arg7[%c0_16, %c0_17] : memref<1x32xf32, #tpu.memory_space<vmem>>, vector<1x32xf32>
    %19 = vector.broadcast %18 : vector<1x32xf32> to vector<16x32xf32>
    %20 = arith.addf %17, %19 : vector<16x32xf32>
    %cst_18 = arith.constant 0.000000e+00 : f32
    %21 = vector.broadcast %cst_18 : f32 to vector<16x32xf32>
    %22 = arith.maximumf %20, %21 : vector<16x32xf32>
    %c0_19 = arith.constant 0 : index
    %c0_20 = arith.constant 0 : index
    %23 = vector.load %arg8[%c0_19, %c0_20] : memref<32x32xf32, #tpu.memory_space<vmem>>, vector<32x32xf32>
    %cst_21 = arith.constant dense<0.000000e+00> : vector<16x32xf32>
    %24 = tpu.matmul %22, %23, %cst_21 {dimension_numbers = #tpu.dot_dimension_numbers<[1], [0], [0], [1], [0, 0, 1, 1], [], []>} : vector<16x32xf32>, vector<32x32xf32>, vector<16x32xf32> -> vector<16x32xf32>
    %c0_22 = arith.constant 0 : index
    %c0_23 = arith.constant 0 : index
    %25 = vector.load %arg9[%c0_22, %c0_23] : memref<1x32xf32, #tpu.memory_space<vmem>>, vector<1x32xf32>
    %26 = vector.broadcast %25 : vector<1x32xf32> to vector<16x32xf32>
    %27 = arith.addf %24, %26 : vector<16x32xf32>
    %28 = arith.addf %13, %27 : vector<16x32xf32>
    %cst_24 = arith.constant 0.000000e+00 : f32
    %29 = vector.broadcast %cst_24 : f32 to vector<16x32xf32>
    %30 = arith.maximumf %28, %29 : vector<16x32xf32>
    %c0_25 = arith.constant 0 : index
    %c0_26 = arith.constant 0 : index
    %31 = vector.load %arg10[%c0_25, %c0_26] : memref<32x32xf32, #tpu.memory_space<vmem>>, vector<32x32xf32>
    %cst_27 = arith.constant dense<0.000000e+00> : vector<16x32xf32>
    %32 = tpu.matmul %30, %31, %cst_27 {dimension_numbers = #tpu.dot_dimension_numbers<[1], [0], [0], [1], [0, 0, 1, 1], [], []>} : vector<16x32xf32>, vector<32x32xf32>, vector<16x32xf32> -> vector<16x32xf32>
    %c0_28 = arith.constant 0 : index
    %c0_29 = arith.constant 0 : index
    %33 = vector.load %arg11[%c0_28, %c0_29] : memref<1x32xf32, #tpu.memory_space<vmem>>, vector<1x32xf32>
    %34 = vector.broadcast %33 : vector<1x32xf32> to vector<16x32xf32>
    %35 = arith.addf %32, %34 : vector<16x32xf32>
    %cst_30 = arith.constant 0.000000e+00 : f32
    %36 = vector.broadcast %cst_30 : f32 to vector<16x32xf32>
    %37 = arith.maximumf %35, %36 : vector<16x32xf32>
    %c0_31 = arith.constant 0 : index
    %c0_32 = arith.constant 0 : index
    %38 = vector.load %arg12[%c0_31, %c0_32] : memref<32x32xf32, #tpu.memory_space<vmem>>, vector<32x32xf32>
    %cst_33 = arith.constant dense<0.000000e+00> : vector<16x32xf32>
    %39 = tpu.matmul %37, %38, %cst_33 {dimension_numbers = #tpu.dot_dimension_numbers<[1], [0], [0], [1], [0, 0, 1, 1], [], []>} : vector<16x32xf32>, vector<32x32xf32>, vector<16x32xf32> -> vector<16x32xf32>
    %c0_34 = arith.constant 0 : index
    %c0_35 = arith.constant 0 : index
    %40 = vector.load %arg13[%c0_34, %c0_35] : memref<1x32xf32, #tpu.memory_space<vmem>>, vector<1x32xf32>
    %41 = vector.broadcast %40 : vector<1x32xf32> to vector<16x32xf32>
    %42 = arith.addf %39, %41 : vector<16x32xf32>
    %43 = arith.addf %28, %42 : vector<16x32xf32>
    %cst_36 = arith.constant 0.000000e+00 : f32
    %44 = vector.broadcast %cst_36 : f32 to vector<16x32xf32>
    %45 = arith.maximumf %43, %44 : vector<16x32xf32>
    %c0_37 = arith.constant 0 : index
    %c0_38 = arith.constant 0 : index
    %46 = vector.load %arg14[%c0_37, %c0_38] : memref<32x128xf32, #tpu.memory_space<vmem>>, vector<32x128xf32>
    %cst_39 = arith.constant dense<0.000000e+00> : vector<16x128xf32>
    %47 = tpu.matmul %45, %46, %cst_39 {dimension_numbers = #tpu.dot_dimension_numbers<[1], [0], [0], [1], [0, 0, 1, 1], [], []>} : vector<16x32xf32>, vector<32x128xf32>, vector<16x128xf32> -> vector<16x128xf32>
    %c0_40 = arith.constant 0 : index
    %c0_41 = arith.constant 0 : index
    %48 = vector.load %arg15[%c0_40, %c0_41] : memref<1x128xf32, #tpu.memory_space<vmem>>, vector<1x128xf32>
    %49 = vector.broadcast %48 : vector<1x128xf32> to vector<16x128xf32>
    %50 = arith.addf %47, %49 : vector<16x128xf32>
    %51 = arith.mulf %50, %50 : vector<16x128xf32>
    %52 = tpu.iota {dimensions = array<i32: 1>} : vector<16x128xi32>
    %c1_i32 = arith.constant 1 : i32
    %53 = vector.broadcast %c1_i32 : i32 to vector<16x128xi32>
    %54 = arith.andi %52, %53 : vector<16x128xi32>
    %c0_i32 = arith.constant 0 : i32
    %55 = vector.broadcast %c0_i32 : i32 to vector<16x128xi32>
    %56 = arith.cmpi eq, %54, %55 : vector<16x128xi32>
    %c127_i32 = arith.constant 127 : i32
    %57 = tpu.dynamic_rotate %51 by %c127_i32 dim 1 : vector<16x128xf32>, i32 -> vector<16x128xf32>
    %c1_i32_42 = arith.constant 1 : i32
    %58 = tpu.dynamic_rotate %51 by %c1_i32_42 dim 1 : vector<16x128xf32>, i32 -> vector<16x128xf32>
    %59 = arith.select %56, %57, %58 : vector<16x128xi1>, vector<16x128xf32>
    %60 = arith.addf %51, %59 : vector<16x128xf32>
    %cst_43 = arith.constant 9.99999993E-9 : f32
    %61 = vector.broadcast %cst_43 : f32 to vector<16x128xf32>
    %62 = arith.maximumf %60, %61 : vector<16x128xf32>
    %63 = math.rsqrt %62 : vector<16x128xf32>
    %64 = arith.mulf %50, %63 : vector<16x128xf32>
    %c64_i32 = arith.constant 64 : i32
    %65 = vector.broadcast %c64_i32 : i32 to vector<16x128xi32>
    %66 = arith.cmpi slt, %52, %65 : vector<16x128xi32>
    %67 = arith.select %66, %50, %64 : vector<16x128xi1>, vector<16x128xf32>
    %c0_44 = arith.constant 0 : index
    %c0_45 = arith.constant 0 : index
    %68 = vector.load %arg16[%c0_44, %c0_45] : memref<16x128xf32, #tpu.memory_space<vmem>>, vector<16x128xf32>
    tpu.vector_store %arg16[%c0_44, %c0_45], %67 {strides = array<i32>} : memref<16x128xf32, #tpu.memory_space<vmem>>, vector<16x128xf32>,
    return
  }
  func.func @transform_0(%arg0: i32) -> (i32, i32) {
    %c0_i32 = arith.constant 0 : i32
    %c0_i32_0 = arith.constant 0 : i32
    return %arg0, %c0_i32 : i32, i32
  }
  func.func @transform_1(%arg0: i32) -> (i32, i32) {
    %c0_i32 = arith.constant 0 : i32
    %c0_i32_0 = arith.constant 0 : i32
    return %arg0, %c0_i32 : i32, i32
  }
  func.func @transform_2(%arg0: i32) -> (i32, i32) {
    %c0_i32 = arith.constant 0 : i32
    %c0_i32_0 = arith.constant 0 : i32
    %c0_i32_1 = arith.constant 0 : i32
    return %c0_i32, %c0_i32_0 : i32, i32
  }
  func.func @transform_3(%arg0: i32) -> (i32, i32) {
    %c0_i32 = arith.constant 0 : i32
    %c0_i32_0 = arith.constant 0 : i32
    %c0_i32_1 = arith.constant 0 : i32
    return %c0_i32, %c0_i32_0 : i32, i32
  }
  func.func @transform_4(%arg0: i32) -> (i32, i32) {
    %c0_i32 = arith.constant 0 : i32
    %c0_i32_0 = arith.constant 0 : i32
    %c0_i32_1 = arith.constant 0 : i32
    return %c0_i32, %c0_i32_0 : i32, i32
  }
  func.func @transform_5(%arg0: i32) -> (i32, i32) {
    %c0_i32 = arith.constant 0 : i32
    %c0_i32_0 = arith.constant 0 : i32
    %c0_i32_1 = arith.constant 0 : i32
    return %c0_i32, %c0_i32_0 : i32, i32
  }
  func.func @transform_6(%arg0: i32) -> (i32, i32) {
    %c0_i32 = arith.constant 0 : i32
    %c0_i32_0 = arith.constant 0 : i32
    %c0_i32_1 = arith.constant 0 : i32
    return %c0_i32, %c0_i32_0 : i32, i32
  }
  func.func @transform_7(%arg0: i32) -> (i32, i32) {
    %c0_i32 = arith.constant 0 : i32
    %c0_i32_0 = arith.constant 0 : i32
    %c0_i32_1 = arith.constant 0 : i32
    return %c0_i32, %c0_i32_0 : i32, i32
  }
  func.func @transform_8(%arg0: i32) -> (i32, i32) {
    %c0_i32 = arith.constant 0 : i32
    %c0_i32_0 = arith.constant 0 : i32
    %c0_i32_1 = arith.constant 0 : i32
    return %c0_i32, %c0_i32_0 : i32, i32
  }
  func.func @transform_9(%arg0: i32) -> (i32, i32) {
    %c0_i32 = arith.constant 0 : i32
    %c0_i32_0 = arith.constant 0 : i32
    %c0_i32_1 = arith.constant 0 : i32
    return %c0_i32, %c0_i32_0 : i32, i32
  }
  func.func @transform_10(%arg0: i32) -> (i32, i32) {
    %c0_i32 = arith.constant 0 : i32
    %c0_i32_0 = arith.constant 0 : i32
    %c0_i32_1 = arith.constant 0 : i32
    return %c0_i32, %c0_i32_0 : i32, i32
  }
  func.func @transform_11(%arg0: i32) -> (i32, i32) {
    %c0_i32 = arith.constant 0 : i32
    %c0_i32_0 = arith.constant 0 : i32
    %c0_i32_1 = arith.constant 0 : i32
    return %c0_i32, %c0_i32_0 : i32, i32
  }
  func.func @transform_12(%arg0: i32) -> (i32, i32) {
    %c0_i32 = arith.constant 0 : i32
    %c0_i32_0 = arith.constant 0 : i32
    %c0_i32_1 = arith.constant 0 : i32
    return %c0_i32, %c0_i32_0 : i32, i32
  }
  func.func @transform_13(%arg0: i32) -> (i32, i32) {
    %c0_i32 = arith.constant 0 : i32
    %c0_i32_0 = arith.constant 0 : i32
    %c0_i32_1 = arith.constant 0 : i32
    return %c0_i32, %c0_i32_0 : i32, i32
  }
  func.func @transform_14(%arg0: i32) -> (i32, i32) {
    %c0_i32 = arith.constant 0 : i32
    %c0_i32_0 = arith.constant 0 : i32
    %c0_i32_1 = arith.constant 0 : i32
    return %c0_i32, %c0_i32_0 : i32, i32
  }
  func.func @transform_15(%arg0: i32) -> (i32, i32) {
    %c0_i32 = arith.constant 0 : i32
    %c0_i32_0 = arith.constant 0 : i32
    return %arg0, %c0_i32 : i32, i32
  }
}

</mosaic_0001>

<bundles_post_ra>
// kernel: tpu_custom_call.1
= control target key start
LH: loop header
LB: loop body
LE: loop exit
PB: predicated region body
PF: predicated region fallthrough
CT: control target
= control target key end

     0   :  { %20 = vsyncpa [#allocation3], 0  ;;  %s1023_s0 = inlined_call_operand.hbm [shape: f32[16,32], index: 0, kind: input, shape index: {}]   ;;  %s1024_s1 = inlined_call_operand.hbm [shape: f32[16,32], index: 1, kind: input, shape index: {}]   ;;  %s1025_s2 = inlined_call_operand.hbm [shape: f32[32,32], index: 2, kind: input, shape index: {}]   ;;  %s1026_s3 = inlined_call_operand.hbm [shape: f32[32,32], index: 3, kind: input, shape index: {}]   ;;  %s1027_s4 = inlined_call_operand.vmem [shape: f32[1,32], index: 4, kind: input, shape index: {}]   ;;  %s1028_s5 = inlined_call_operand.hbm [shape: f32[32,32], index: 5, kind: input, shape index: {}]   ;;  %s1029_s6 = inlined_call_operand.vmem [shape: f32[1,32], index: 6, kind: input, shape index: {}]   ;;  %s1030_s7 = inlined_call_operand.hbm [shape: f32[32,32], index: 7, kind: input, shape index: {}]   ;;  %s1031_s8 = inlined_call_operand.vmem [shape: f32[1,32], index: 8, kind: input, shape index: {}]   ;;  %s1032_s9 = inlined_call_operand.hbm [shape: f32[32,32], index: 9, kind: input, shape index: {}]   ;;  %s1033_s10 = inlined_call_operand.vmem [shape: f32[1,32], index: 10, kind: input, shape index: {}]   ;;  %s1034_s11 = inlined_call_operand.hbm [shape: f32[32,32], index: 11, kind: input, shape index: {}]   ;;  %s1035_s12 = inlined_call_operand.vmem [shape: f32[1,32], index: 12, kind: input, shape index: {}]   ;;  %s1036_s13 = inlined_call_operand.hbm [shape: f32[32,128], index: 13, kind: input, shape index: {}]   ;;  %s1037_s14 = inlined_call_operand.vmem [shape: f32[1,128], index: 14, kind: input, shape index: {}]   ;;  %s1038_s15 = inlined_call_operand.hbm [shape: f32[16,128], index: 15, kind: output, shape index: {}]  }
   0x1   :  { %21 = vsyncpa [#allocation6], 0 }
   0x2   :  { %22 = vsyncpa [#allocation9], 0 }
   0x3   :  { %23 = vsyncpa [#allocation12], 0 }
   0x4   :  { %24 = vsyncpa [#allocation15], 0 }
   0x5   :  { %25 = vsyncpa [#allocation4], 0  ;;  %s43_s20 = sshll.u32 %s1024_s1, 4  ;;  %s835_s21 = smov [#allocation5]   ;;  %s44_s20 = int_to_ptr.hbm [resolvable:$true] %s43_s20 }
   0x6   :  { %s45_s22 = sshll.u32 %s835_s21, 4  ;;  %s69_s25 = sshll.u32 %s1026_s3, 4  ;;  %s46_s22 = int_to_ptr.vmem [resolvable:$true] %s45_s22  ;;  %s70_s25 = int_to_ptr.hbm [resolvable:$true] %s69_s25 }
   0x7   :  { %s836_s26 = smov 128   ;;  %s837_s27 = smov 8  }
   0x8   :  { %51 = dma.hbm_to_vmem [thread:$0]  %s44_s20, 256, %s46_s22, [#allocation6], %s836_s26, %s836_s26, %s837_s27  }
   0x9   :  { %s838_s28 = smov [#allocation8]   ;;  %s99_s1 = sshll.u32 %s1030_s7, 4  ;;  %s100_s1 = int_to_ptr.hbm [resolvable:$true] %s99_s1 }
   0xa   :  { %s71_s29 = sshll.u32 %s838_s28, 4  ;;  %s129_s18 = sshll.u32 %s1034_s11, 4  ;;  %s72_s29 = int_to_ptr.vmem [resolvable:$true] %s71_s29  ;;  %s130_s18 = int_to_ptr.hbm [resolvable:$true] %s129_s18 }
   0xb   :  { %77 = dma.hbm_to_vmem [thread:$0]  %s70_s25, 512, %s72_s29, [#allocation9], %s836_s26, %s836_s26, %s837_s27  }
   0xc   :  { %s839_s19 = smov [#allocation11]   ;;  %s840_s20 = smov [#allocation14]  }
   0xd   :  { %s101_s21 = sshll.u32 %s839_s19, 4  ;;  %s131_s7 = sshll.u32 %s840_s20, 4  ;;  %s102_s21 = int_to_ptr.vmem [resolvable:$true] %s101_s21  ;;  %s132_s7 = int_to_ptr.vmem [resolvable:$true] %s131_s7 }
   0xe   :  { %107 = dma.hbm_to_vmem [thread:$0]  %s100_s1, 512, %s102_s21, [#allocation12], %s836_s26, %s836_s26, %s837_s27  }
   0xf   :  { %s30_s24 = sshll.u32 %s1023_s0, 4  ;;  %s56_s28 = sshll.u32 %s1025_s2, 4  ;;  %s31_s24 = int_to_ptr.hbm [resolvable:$true] %s30_s24  ;;  %s57_s28 = int_to_ptr.hbm [resolvable:$true] %s56_s28 }
  0x10   :  { %137 = dma.hbm_to_vmem [thread:$0]  %s130_s18, 512, %s132_s7, [#allocation15], %s836_s26, %s836_s26, %s837_s27  }
  0x11   :  { %s841_s29 = smov [#allocation2]   ;;  %s842_s16 = smov [#allocation7]  }
  0x12   :  { %s32_s30 = sshll.u32 %s841_s29, 4  ;;  %s58_s0 = sshll.u32 %s842_s16, 4  ;;  %s33_s30 = int_to_ptr.vmem [resolvable:$true] %s32_s30  ;;  %s59_s0 = int_to_ptr.vmem [resolvable:$true] %s58_s0 }
  0x13   :  { %38 = dma.hbm_to_vmem [thread:$0]  %s31_s24, 256, %s33_s30, [#allocation3], %s836_s26, %s836_s26, %s837_s27  }
  0x14   :  { %s84_s17 = sshll.u32 %s1028_s5, 4  ;;  %s114_s19 = sshll.u32 %s1032_s9, 4  ;;  %s85_s17 = int_to_ptr.hbm [resolvable:$true] %s84_s17  ;;  %s115_s19 = int_to_ptr.hbm [resolvable:$true] %s114_s19 }
  0x15   :  { %64 = dma.hbm_to_vmem [thread:$0]  %s57_s28, 512, %s59_s0, [#allocation6], %s836_s26, %s836_s26, %s837_s27  }
  0x16   :  { %s843_s21 = smov [#allocation10]   ;;  %s844_s7 = smov [#allocation13]  }
  0x17   :  { %s86_s20 = sshll.u32 %s843_s21, 4  ;;  %s116_s5 = sshll.u32 %s844_s7, 4  ;;  %s87_s20 = int_to_ptr.vmem [resolvable:$true] %s86_s20  ;;  %s117_s5 = int_to_ptr.vmem [resolvable:$true] %s116_s5 }
  0x18   :  { %92 = dma.hbm_to_vmem [thread:$0]  %s85_s17, 512, %s87_s20, [#allocation9], %s836_s26, %s836_s26, %s837_s27  }
  0x19   :  { %s144_s24 = sshll.u32 %s1036_s13, 4  ;;  %s845_s9 = smov [#allocation16]   ;;  %s145_s24 = int_to_ptr.hbm [resolvable:$true] %s144_s24 }
  0x1a   :  { %122 = dma.hbm_to_vmem [thread:$0]  %s115_s19, 512, %s117_s5, [#allocation12], %s836_s26, %s836_s26, %s837_s27  }
  0x1b   :  { %s146_s11 = sshll.u32 %s845_s9, 4  ;;  %s147_s11 = int_to_ptr.vmem [resolvable:$true] %s146_s11 }
  0x1c   :  { %152 = dma.hbm_to_vmem [thread:$0]  %s145_s24, 512, %s147_s11, [#allocation15], %s836_s26, %s836_s26, %s837_s27  }
  0x1d   :  { %823 = dma.done.wait [#allocation3], 256  }
  0x1e   :  { %824 = vsyncadd [#allocation3], 4294967040 }
  0x1f   :  { %825 = dma.done.wait [#allocation6], 768  }
  0x20   :  { %826 = vsyncadd [#allocation6], 4294966528 }
  0x21   :  { %827 = dma.done.wait [#allocation9], 1024  }
  0x22   :  { %828 = vsyncadd [#allocation9], 4294966272 }
  0x23   :  { %829 = dma.done.wait [#allocation12], 1024  }
  0x24   :  { %830 = vsyncadd [#allocation12], 4294966272 }
  0x25   :  { %831 = dma.done.wait [#allocation15], 1024  }
  0x26   :  { %832 = vsyncadd [#allocation15], 4294966272  ;;  %v206_v0 = vld [vmem:[#allocation8 + $0x18] sm:$0xff]  ;;  %v205_v2 = vld [vmem:[#allocation8 + $0x10] sm:$0xff]  ;;  %vm207_vm0 = vcmask 261120   ;;  %s847_s3 = smov 127  }
  0x27   :  { %v198_v1 = vld [vmem:[#allocation7 + $0x18] sm:$0xff]  ;;  %226 = vmatpush.msra.mxu0 %v206_v0  ;;  %v197_v3 = vld [vmem:[#allocation7 + $0x10] sm:$0xff]  ;;  %555 = vmatpush.msra.mxu3 %v206_v0  ;;  %v204_v4 = vld [vmem:[#allocation8 + $0x8] sm:$0xff]  ;;  %s524_s19 = sshll.u32 %s1038_s15, 4  ;;  %s525_s19 = int_to_ptr.hbm [resolvable:$true] %s524_s19 }
  0x28   :  { %255 = vmatpush.msra.mxu1 %v198_v1  ;;  %v196_v5 = vld [vmem:[#allocation7 + $0x8] sm:$0xff]  ;;  %v199_v6 = vld [vmem:[#allocation5] sm:$0xff]  ;;  %v191_v7 = vld [vmem:[#allocation2] sm:$0xff] }
  0x29   :  { %227 = vmatpush.msra.mxu0 %v205_v2  ;;  %v200_v8 = vld [vmem:[#allocation5 + $0x8] sm:$0xff]  ;;  %556 = vmatpush.msra.mxu3 %v205_v2  ;;  %v203_v9 = vld [vmem:[#allocation8] sm:$0xff]  ;;  %v201_v11 = vmax.f32 %v199_v6, 0.0  ;;  %v193_v12 = vmax.f32 %v191_v7, 0.0  ;;  %v192_v14 = vld [vmem:[#allocation2 + $0x8] sm:$0xff] }
  0x2a   :  { %256 = vmatpush.msra.mxu1 %v197_v3  ;;  %v195_v10 = vld [vmem:[#allocation7] sm:$0xff]  ;;  %v202_v13 = vmax.f32 %v200_v8, 0.0  ;;  %v194_v15 = vmax.f32 %v192_v14, 0.0  ;;  %v277_v16 = vld [vmem:[#allocation10 + $0x18] sm:$0xff]  ;;  %v276_v17 = vld [vmem:[#allocation10 + $0x10] sm:$0xff] }
  0x2b   :  { %228 = vmatpush.msra.mxu0 %v204_v4  ;;  %557 = vmatpush.msra.mxu3 %v204_v4  ;;  %v275_v18 = vld [vmem:[#allocation10 + $0x8] sm:$0xff]  ;;  %v274_v19 = vld [vmem:[#allocation10] sm:$0xff]  ;;  %v316_v20 = vld [vmem:[#allocation11 + $0x18] sm:$0xff] }
  0x2c   :  { %257 = vmatpush.msra.mxu1 %v196_v5  ;;  %300 = vmatpush.msra.mxu2 %v277_v16  ;;  %v315_v21 = vld [vmem:[#allocation11 + $0x10] sm:$0xff]  ;;  %v573_v22 = vld [vmem:[%s1027_s4] ss:$0 sm:$0xff]  ;;  %v314_v33 = vld [vmem:[#allocation11 + $0x8] sm:$0xff] }
  0x2d   :  { %229 = vmatpush.msra.mxu0 %v203_v9  ;;  %558 = vmatpush.msra.mxu3 %v203_v9  ;;  %v313_v34 = vld [vmem:[#allocation11] sm:$0xff]  ;;  %v357_v35 = vld [vmem:[#allocation13 + $0x18] sm:$0xff]  ;;  %v356_v43 = vld [vmem:[#allocation13 + $0x10] sm:$0xff] }
  0x2e   :  { %258 = vmatpush.msra.mxu1 %v195_v10  ;;  %541 = vmatmul.msk.f32.vlgmr.msra.gmra.mxu0 %vm207_vm0, %v201_v11  ;;  %v574_v36 = vld [vmem:[%s1029_s6] ss:$0 sm:$0xff]  ;;  %v355_v44 = vld [vmem:[#allocation13 + $0x8] sm:$0xff]  ;;  %v396_v46 = vld [vmem:[#allocation14 + $0x18] sm:$0xff] }
  0x2f   :  { %543 = vmatmul.msk.f32.vlgmr.msra.gmra.mxu1 %vm207_vm0, %v193_v12  ;;  %542 = vmatmul.msk.f32.vlgmr.msra.gmra.mxu3 %vm207_vm0, %v202_v13  ;;  %v354_v45 = vld [vmem:[#allocation13] sm:$0xff]  ;;  %v395_v47 = vld [vmem:[#allocation14 + $0x10] sm:$0xff]  ;;  %v394_v48 = vld [vmem:[#allocation14 + $0x8] sm:$0xff] }
  0x30   :  { %301 = vmatpush.msra.mxu2 %v276_v17  ;;  %339 = vmatpush.msrb.mxu3 %v316_v20  ;;  %v575_v49 = vld [vmem:[%s1031_s8] ss:$0 sm:$0xff]  ;;  %v437_v59 = vld [vmem:[#allocation16 + $0x18] sm:$0xff]  ;;  %v436_v60 = vld [vmem:[#allocation16 + $0x10] sm:$0xff] }
  0x31   :  { %380 = vmatpush.msrb.mxu0 %v357_v35  ;;  %419 = vmatpush.msrb.mxu1 %v396_v46  ;;  %v393_v58 = vld [vmem:[#allocation14] sm:$0xff]  ;;  %v435_v61 = vld [vmem:[#allocation16 + $0x8] sm:$0xff] }
  0x32   :  { %302 = vmatpush.msra.mxu2 %v275_v18  ;;  %340 = vmatpush.msrb.mxu3 %v315_v21  ;;  %v576_v62 = vld [vmem:[%s1033_s10] ss:$0 sm:$0xff] }
  0x33   :  { %381 = vmatpush.msrb.mxu0 %v356_v43  ;;  %420 = vmatpush.msrb.mxu1 %v395_v47  ;;  %v434_v5 = vld [vmem:[#allocation16] sm:$0xff] }
  0x34   :  { %303 = vmatpush.msra.mxu2 %v274_v19  ;;  %341 = vmatpush.msrb.mxu3 %v314_v33  ;;  %v577_v6 = vld [vmem:[%s1035_s12] ss:$0 sm:$0xff]  ;;  %s846_s12 = smov 1  }
  0x35   :  { %382 = vmatpush.msrb.mxu0 %v355_v44  ;;  %421 = vmatpush.msrb.mxu1 %v394_v48 }
  0x36   :  { %342 = vmatpush.msrb.mxu3 %v313_v34  ;;  %460 = vmatpush.msrb.mxu2 %v437_v59 }
  0x37   :  { %544 = vmatmul.msk.f32.gmra.mxu1 %vm207_vm0, %v194_v15  ;;  %383 = vmatpush.msrb.mxu0 %v354_v45  ;;  %v578_v15 = vld [vmem:[%s1037_s14] ss:$0 sm:$0xff]  ;;  %s848_s14 = smov [#allocation17]  }
  0x38   :  { %422 = vmatpush.msrb.mxu1 %v393_v58  ;;  %461 = vmatpush.msrb.mxu2 %v436_v60  ;;  %s522_s17 = sshll.u32 %s848_s14, 4  ;;  %s523_s17 = int_to_ptr.vmem [resolvable:$true] %s522_s17 }
  0x3a   :  { %462 = vmatpush.msrb.mxu2 %v435_v61 }
  0x3c   :  { %463 = vmatpush.msrb.mxu2 %v434_v5 }
  0xab   :  { %v231_v23 = vpop.f32.mrf.mxu0 }
  0xac   :  { %v260_v24 = vpop.f32.mrf.mxu1 }
  0xad   :  { %v261_v25 = vadd.f32 %v260_v24, %v231_v23 }
  0xaf   :  { %v270_v26 = vadd.f32 %v573_v22, %v261_v25 }
  0xb1   :  { %v272_v27 = vmax.f32 %v270_v26, 0.0 }
  0xb2   :  { %v234_v28 = vpop.f32.mrf.mxu3 }
  0xb3   :  { %545 = vmatmul.msk.f32.vlgmr.msra.gmra.mxu2 %vm207_vm0, %v272_v27 }
  0xb4   :  { %v263_v29 = vpop.f32.mrf.mxu1 }
  0xb5   :  { %v264_v30 = vadd.f32 %v263_v29, %v234_v28 }
  0xb7   :  { %v271_v31 = vadd.f32 %v573_v22, %v264_v30  ;;  %v473_v22 = vlaneseq }
  0xb9   :  { %v273_v32 = vmax.f32 %v271_v31, 0.0  ;;  %v474_v23 = vand.u32 127, %v473_v22 }
  0xbb   :  { %546 = vmatmul.msk.f32.gmra.mxu2 %vm207_vm0, %v273_v32  ;;  %v475_v24 = vand.u32 1, %v474_v23  ;;  %vm513_vm5 = vcmp.lt.s32.totalorder %v474_v23, 64 }
  0xbd   :  { %vm476_vm1 = vcmp.eq.s32.totalorder %v475_v24, 0 }
 0x136   :  { %v305_v37 = vpop.f32.mrf.mxu2 }
 0x137   :  { %v306_v38 = vadd.f32 %v574_v36, %v305_v37 }
 0x139   :  { %v311_v39 = vmax.f32 %v306_v38, 0.0 }
 0x13b   :  { %547 = vmatmul.msk.f32.vlgmr.msrb.gmra.mxu3 %vm207_vm0, %v311_v39 }
 0x13e   :  { %v308_v40 = vpop.f32.mrf.mxu2 }
 0x13f   :  { %v309_v41 = vadd.f32 %v574_v36, %v308_v40 }
 0x141   :  { %v312_v42 = vmax.f32 %v309_v41, 0.0 }
 0x143   :  { %548 = vmatmul.msk.f32.gmra.mxu3 %vm207_vm0, %v312_v42 }
 0x1be   :  { %v344_v50 = vpop.f32.mrf.mxu3 }
 0x1bf   :  { %v345_v51 = vadd.f32 %v575_v49, %v344_v50 }
 0x1c1   :  { %v350_v52 = vadd.f32 %v345_v51, %v270_v26 }
 0x1c3   :  { %v352_v53 = vmax.f32 %v350_v52, 0.0 }
 0x1c5   :  { %549 = vmatmul.msk.f32.vlgmr.msrb.gmra.mxu0 %vm207_vm0, %v352_v53 }
 0x1c6   :  { %v347_v54 = vpop.f32.mrf.mxu3 }
 0x1c7   :  { %v348_v55 = vadd.f32 %v575_v49, %v347_v54 }
 0x1c9   :  { %v351_v56 = vadd.f32 %v348_v55, %v271_v31 }
 0x1cb   :  { %v353_v57 = vmax.f32 %v351_v56, 0.0 }
 0x1cd   :  { %550 = vmatmul.msk.f32.gmra.mxu0 %vm207_vm0, %v353_v57 }
 0x242   :  { %v385_v63 = vpop.f32.mrf.mxu0 }
 0x243   :  { %v386_v0 = vadd.f32 %v576_v62, %v385_v63 }
 0x245   :  { %v391_v1 = vmax.f32 %v386_v0, 0.0 }
 0x247   :  { %551 = vmatmul.msk.f32.vlgmr.msrb.gmra.mxu1 %vm207_vm0, %v391_v1 }
 0x24a   :  { %v388_v2 = vpop.f32.mrf.mxu0 }
 0x24b   :  { %v389_v3 = vadd.f32 %v576_v62, %v388_v2 }
 0x24d   :  { %v392_v4 = vmax.f32 %v389_v3, 0.0 }
 0x24f   :  { %552 = vmatmul.msk.f32.gmra.mxu1 %vm207_vm0, %v392_v4 }
 0x2c4   :  { %v424_v7 = vpop.f32.mrf.mxu1 }
 0x2c5   :  { %v425_v8 = vadd.f32 %v577_v6, %v424_v7 }
 0x2c7   :  { %v430_v9 = vadd.f32 %v425_v8, %v350_v52 }
 0x2c9   :  { %v432_v10 = vmax.f32 %v430_v9, 0.0 }
 0x2cb   :  { %553 = vmatmul.msk.f32.vlgmr.msrb.gmra.mxu2 %vm207_vm0, %v432_v10 }
 0x2cc   :  { %v427_v11 = vpop.f32.mrf.mxu1 }
 0x2cd   :  { %v428_v12 = vadd.f32 %v577_v6, %v427_v11 }
 0x2cf   :  { %v431_v13 = vadd.f32 %v428_v12, %v351_v56 }
 0x2d1   :  { %v433_v14 = vmax.f32 %v431_v13, 0.0 }
 0x2d3   :  { %554 = vmatmul.msk.f32.gmra.mxu2 %vm207_vm0, %v433_v14 }
 0x34e   :  { %v465_v16 = vpop.f32.mrf.mxu2 }
 0x34f   :  { %v466_v17 = vadd.f32 %v578_v15, %v465_v16 }
 0x351   :  { %v471_v18 = vmul.f32 %v466_v17, %v466_v17 }
 0x353   :  { %481 = vrot.lane.b32.xlu1 %v471_v18, %s846_s12  ;;  %477 = vrot.lane.b32.xlu0 %v471_v18, %s847_s3 }
 0x356   :  { %v468_v19 = vpop.f32.mrf.mxu2 }
 0x357   :  { %v469_v20 = vadd.f32 %v578_v15, %v468_v19 }
 0x359   :  { %v472_v21 = vmul.f32 %v469_v20, %v469_v20 }
 0x35b   :  { %483 = vrot.lane.b32.xlu1 %v472_v21, %s846_s12  ;;  %479 = vrot.lane.b32.xlu0 %v472_v21, %s847_s3 }
 0x3c5   :  { %v482_v25 = vpop.permute.xlu1 %481  ;;  %v478_v26 = vpop.permute.xlu0 %477 }
 0x3c6   :  { %v485_v27 = vsel %vm476_vm1, %v478_v26, %v482_v25 }
 0x3c7   :  { %v487_v28 = vadd.f32 %v485_v27, %v471_v18 }
 0x3c9   :  { %v489_v29 = vmax.f32 %v487_v28, 1e-08 }
 0x3cb   :  { %579 = vrsqrt.f32 %v489_v29  ;;  %vm497_vm3 = vweird.f32 %v489_v29 }
 0x3cd   :  { %v484_v30 = vpop.permute.xlu1 %483  ;;  %v480_v31 = vpop.permute.xlu0 %479 }
 0x3ce   :  { %v486_v32 = vsel %vm476_vm1, %v480_v31, %v484_v30 }
 0x3cf   :  { %v488_v33 = vadd.f32 %v486_v32, %v472_v21 }
 0x3d1   :  { %v580_v34 = vpop.eup %579  ;;  %v490_v35 = vmax.f32 %v488_v33, 1e-08 }
 0x3d2   :  { %v492_v36 = vmul.f32 %v580_v34, %v489_v29  ;;  %vm498_vm2 = vweird.f32 %v580_v34 }
 0x3d3   :  { %581 = vrsqrt.f32 %v490_v35  ;;  %vm499_vm4 = vmor %vm497_vm3, %vm498_vm2  ;;  %vm507_vm7 = vweird.f32 %v490_v35 }
 0x3d4   :  { %v493_v37 = vmul.f32 %v580_v34, %v492_v36 }
 0x3d6   :  { %v494_v38 = vmul.f32 0.5, %v493_v37 }
 0x3d8   :  { %v495_v39 = vsub.f32 1.5, %v494_v38 }
 0x3d9   :  { %v582_v40 = vpop.eup %581 }
 0x3da   :  { %v496_v41 = vmul.f32 %v580_v34, %v495_v39  ;;  %v502_v42 = vmul.f32 %v582_v40, %v490_v35  ;;  %vm508_vm6 = vweird.f32 %v582_v40 }
 0x3db   :  { %vm509_vm8 = vmor %vm507_vm7, %vm508_vm6 }
 0x3dc   :  { %v500_v43 = vsel %vm499_vm4, %v580_v34, %v496_v41  ;;  %v503_v44 = vmul.f32 %v582_v40, %v502_v42 }
 0x3dd   :  { %v511_v45 = vmul.f32 %v500_v43, %v466_v17 }
 0x3de   :  { %v504_v46 = vmul.f32 0.5, %v503_v44 }
 0x3df   :  { %v514_v47 = vsel %vm513_vm5, %v466_v17, %v511_v45 }
 0x3e0   :  { %v505_v48 = vsub.f32 1.5, %v504_v46  ;;  %516 = vst [vmem:[#allocation17] sm:$0xff] %v514_v47 }
 0x3e2   :  { %v506_v49 = vmul.f32 %v582_v40, %v505_v48 }
 0x3e4   :  { %v510_v50 = vsel %vm509_vm8, %v582_v40, %v506_v49 }
 0x3e5   :  { %v512_v51 = vmul.f32 %v510_v50, %v469_v20 }
 0x3e7   :  { %v515_v52 = vsel %vm513_vm5, %v469_v20, %v512_v51 }
 0x3e8   :  { %517 = vst [vmem:[#allocation17 + $0x8] sm:$0xff] %v515_v52 }
 0x3e9   :  { %530 = dma.vmem_to_hbm [thread:$0]  %s523_s17, 256, %s525_s19, [#allocation4], %s836_s26, %s836_s26, %s837_s27  }
 0x3ea   :  { %833 = dma.done.wait [#allocation4], 256  }
 0x3eb   :  { %834 = vsyncadd [#allocation4], 4294967040 }
 0x3ec   :  { %535 = vsyncpa [#allocation3], 1 }
 0x3ed   :  { %536 = vsyncpa [#allocation6], 1 }
 0x3ee   :  { %537 = vsyncpa [#allocation9], 1 }
 0x3ef   :  { %538 = vsyncpa [#allocation12], 1 }
 0x3f0   :  { %539 = vsyncpa [#allocation15], 1 }
 0x3f1   :  { %540 = vsyncpa [#allocation4], 1 }

</bundles_post_ra>
